<compile_context>
chip_gen: v5e
topology: v5e:2x2
jax: 0.10.0
libtpu: 0.0.40
codegen_flags: <defaults>
</compile_context>

<pallas_src>
import jax
import jax.numpy as jnp
from jax.experimental import pallas as pl
from jax.experimental.pallas import tpu as pltpu


def _round_up(n, m):
    return ((n + m - 1) // m) * m


def classifier_kernel(x_ref, w1_ref, b1_ref, w2_ref, b2_ref, w3_ref, b3_ref, o_ref):
    # fc1 + ReLU: cast x to bf16 in-kernel (cheap VPU cast, avoids an extra HBM
    # pass over x in the wrapper); accumulate in f32 on the MXU.
    x_bf = x_ref[...].astype(jnp.bfloat16)
    h1 = jnp.dot(x_bf, w1_ref[...], preferred_element_type=jnp.float32)
    h1 = jnp.maximum(h1 + b1_ref[...], 0.0)

    # fc2 + ReLU
    h2 = jnp.dot(h1.astype(jnp.bfloat16), w2_ref[...],
                 preferred_element_type=jnp.float32)
    h2 = jnp.maximum(h2 + b2_ref[...], 0.0)

    # Output projection (H -> 1), computed transposed so the result is a
    # lane-dense (1, tb) row: logits_row = w3_row @ h2.T (the .T fuses into the
    # dot_general, same lowering pattern as q @ k.T in attention kernels).
    logits_row = jnp.dot(w3_ref[...], h2.T, preferred_element_type=jnp.float32)
    logits_row = logits_row + b3_ref[...]

    # Exact sigmoid (EUP has slack; no accuracy loss from approx reciprocal).
    # Unmasked lane-dense store into the (1, 1, tb) output block.
    o_ref[0] = jax.nn.sigmoid(logits_row)


def prepare_params(w1, b1, w2, b2, w3, b3):
    """One-time parameter prep (hoisted out of the per-call wrapper):
    bf16 MXU operands for w1/w2, f32 biases, w3 as a (1, H) row, b3 as (1, 1)."""
    hidden = w1.shape[1]
    return (
        w1.astype(jnp.bfloat16),
        b1.reshape(1, hidden).astype(jnp.float32),
        w2.astype(jnp.bfloat16),
        b2.reshape(1, hidden).astype(jnp.float32),
        w3.reshape(1, hidden).astype(jnp.float32),
        b3.reshape(1, 1).astype(jnp.float32),
    )


def classifier_forward(x, params, *, max_tb=512, min_split=64):
    """x: (B, 1320) float32. Returns (B, 1) float32 probabilities."""
    w1_bf, b1, w2_bf, b2, w3_row, b3_2d = params
    B, in_dim = x.shape
    hidden = w1_bf.shape[1]
    assert w1_bf.shape[0] == in_dim and w3_row.shape == (1, hidden)

    # ---- adaptive batch tiling ------------------------------------------------
    n_tiles = pl.cdiv(B, max_tb)
    if n_tiles == 1 and B >= 2 * min_split:
        # Split so v7x's two TensorCores both get real rows via the parallel axis.
        n_tiles = 2
    if n_tiles == 1:
        # Single full-array block: exempt from the (8,128) rule, zero padding.
        tb, b_pad = B, B
    else:
        tb = _round_up(pl.cdiv(B, n_tiles), 8)   # <8 padded rows per tile
        b_pad = n_tiles * tb
        if b_pad != B:
            x = jnp.pad(x, ((0, b_pad - B), (0, 0)))
    grid = b_pad // tb

    const = lambda i: (0, 0)  # weights/biases: same block every step -> resident

    out = pl.pallas_call(
        classifier_kernel,
        out_shape=jax.ShapeDtypeStruct((grid, 1, tb), jnp.float32),
        grid_spec=pltpu.PrefetchScalarGridSpec(
            num_scalar_prefetch=0,
            grid=(grid,),
            in_specs=[
                pl.BlockSpec((tb, in_dim), lambda i: (i, 0)),   # x tile (streamed, f32)
                pl.BlockSpec((in_dim, hidden), const),          # w1 (bf16, resident)
                pl.BlockSpec((1, hidden), const),               # b1
                pl.BlockSpec((hidden, hidden), const),          # w2 (bf16, resident)
                pl.BlockSpec((1, hidden), const),               # b2
                pl.BlockSpec((1, hidden), const),               # w3 as a row
                pl.BlockSpec((1, 1), const),                    # b3
            ],
            out_specs=pl.BlockSpec((1, 1, tb), lambda i: (i, 0, 0)),
        ),
        compiler_params=pltpu.CompilerParams(
            dimension_semantics=("parallel",)),
    )(x, w1_bf, b1, w2_bf, b2, w3_row, b3_2d)

    # Lane-dense (grid, 1, tb) back to (B, 1).
    return out.reshape(b_pad)[:B].reshape(B, 1)


def init_params(key, input_dim, hidden_dim, output_dim):
    # Deterministic init mimicking PyTorch nn.Linear default (uniform +/- 1/sqrt(fan_in)).
    # Weights are stored (in_features, out_features), i.e. transposed vs PyTorch.
    ks = jax.random.split(key, 6)

    def lin(kw, kb, fan_in, fan_out):
        bound = 1.0 / jnp.sqrt(fan_in)
        w = jax.random.uniform(kw, (fan_in, fan_out), jnp.float32, -bound, bound)
        b = jax.random.uniform(kb, (fan_out,), jnp.float32, -bound, bound)
        return w, b

    w1, b1 = lin(ks[0], ks[1], input_dim, hidden_dim)
    w2, b2 = lin(ks[2], ks[3], hidden_dim, hidden_dim)
    w3, b3 = lin(ks[4], ks[5], hidden_dim, output_dim)
    return w1, b1, w2, b2, w3, b3


if __name__ == "__main__":
    INPUT_DIM = 55 * 24      # 1320, fixed by the module
    HIDDEN_DIM = 32          # args.classfier_hidden_dim
    OUTPUT_DIM = 1
    BATCH = 10               # small, not a multiple of 8 (exercises full-block path)

    key = jax.random.PRNGKey(0)
    kx, kp = jax.random.split(key)
    x = jax.random.normal(kx, (BATCH, INPUT_DIM), jnp.float32)
    w1, b1, w2, b2, w3, b3 = init_params(kp, INPUT_DIM, HIDDEN_DIM, OUTPUT_DIM)
    params = prepare_params(w1, b1, w2, b2, w3, b3)

    out = classifier_forward(x, params)
    out = jax.block_until_ready(out)

    # Reference in plain JAX (f32). Tolerance accounts for bf16 MXU operands only
    # (sigmoid is exact in the kernel).
    ref = jnp.maximum(x @ w1 + b1, 0.0)
    ref = jnp.maximum(ref @ w2 + b2, 0.0)
    ref = jax.nn.sigmoid(ref @ w3 + b3)
    assert out.shape == (BATCH, OUTPUT_DIM)
    max_err = float(jnp.max(jnp.abs(out - ref)))
    assert jnp.allclose(out, ref, atol=1e-2, rtol=1e-2), f"max_err={max_err}"

    print("KERNEL_OK")
</pallas_src>

<mosaic_0001>
module attributes {stable_mosaic.version = 11 : i64} {
  func.func @classifier_kernel(%arg0: i32, %arg1: memref<10x1320xf32, #tpu.memory_space<vmem>>, %arg2: memref<1320x32xbf16, #tpu.memory_space<vmem>>, %arg3: memref<1x32xf32, #tpu.memory_space<vmem>>, %arg4: memref<32x32xbf16, #tpu.memory_space<vmem>>, %arg5: memref<1x32xf32, #tpu.memory_space<vmem>>, %arg6: memref<1x32xf32, #tpu.memory_space<vmem>>, %arg7: memref<1x1xf32, #tpu.memory_space<vmem>>, %arg8: memref<1x1x10xf32, #tpu.memory_space<vmem>>) attributes {dimension_semantics = [#tpu.dimension_semantics<parallel>], iteration_bounds = array<i64: 1>, scalar_prefetch = 0 : i64, scratch_operands = 0 : i64, tpu.core_type = #tpu.core_type<tc>, window_params = [{transform_indices = @transform_0, window_bounds = array<i64: 10, 1320>}, {pipeline_mode = #tpu.pipeline_mode<synchronous>, transform_indices = @transform_1, window_bounds = array<i64: 1320, 32>}, {pipeline_mode = #tpu.pipeline_mode<synchronous>, transform_indices = @transform_2, window_bounds = array<i64: 1, 32>}, {pipeline_mode = #tpu.pipeline_mode<synchronous>, transform_indices = @transform_3, window_bounds = array<i64: 32, 32>}, {pipeline_mode = #tpu.pipeline_mode<synchronous>, transform_indices = @transform_4, window_bounds = array<i64: 1, 32>}, {pipeline_mode = #tpu.pipeline_mode<synchronous>, transform_indices = @transform_5, window_bounds = array<i64: 1, 32>}, {pipeline_mode = #tpu.pipeline_mode<synchronous>, transform_indices = @transform_6, window_bounds = array<i64: 1, 1>}, {transform_indices = @transform_7, window_bounds = array<i64: 1, 1, 10>}]} {
    %c0 = arith.constant 0 : index
    %c0_0 = arith.constant 0 : index
    %0 = vector.load %arg1[%c0, %c0_0] : memref<10x1320xf32, #tpu.memory_space<vmem>>, vector<10x1320xf32>
    %1 = arith.truncf %0 : vector<10x1320xf32> to vector<10x1320xbf16>
    %c0_1 = arith.constant 0 : index
    %c0_2 = arith.constant 0 : index
    %2 = vector.load %arg2[%c0_1, %c0_2] : memref<1320x32xbf16, #tpu.memory_space<vmem>>, vector<1320x32xbf16>
    %cst = arith.constant dense<0.000000e+00> : vector<10x32xf32>
    %3 = tpu.matmul %1, %2, %cst {dimension_numbers = #tpu.dot_dimension_numbers<[1], [0], [0], [1], [0, 0, 1, 1], [], []>} : vector<10x1320xbf16>, vector<1320x32xbf16>, vector<10x32xf32> -> vector<10x32xf32>
    %c0_3 = arith.constant 0 : index
    %c0_4 = arith.constant 0 : index
    %4 = vector.load %arg3[%c0_3, %c0_4] : memref<1x32xf32, #tpu.memory_space<vmem>>, vector<1x32xf32>
    %5 = vector.broadcast %4 : vector<1x32xf32> to vector<10x32xf32>
    %6 = arith.addf %3, %5 : vector<10x32xf32>
    %cst_5 = arith.constant 0.000000e+00 : f32
    %7 = vector.broadcast %cst_5 : f32 to vector<10x32xf32>
    %8 = arith.maximumf %6, %7 : vector<10x32xf32>
    %9 = arith.truncf %8 : vector<10x32xf32> to vector<10x32xbf16>
    %c0_6 = arith.constant 0 : index
    %c0_7 = arith.constant 0 : index
    %10 = vector.load %arg4[%c0_6, %c0_7] : memref<32x32xbf16, #tpu.memory_space<vmem>>, vector<32x32xbf16>
    %cst_8 = arith.constant dense<0.000000e+00> : vector<10x32xf32>
    %11 = tpu.matmul %9, %10, %cst_8 {dimension_numbers = #tpu.dot_dimension_numbers<[1], [0], [0], [1], [0, 0, 1, 1], [], []>} : vector<10x32xbf16>, vector<32x32xbf16>, vector<10x32xf32> -> vector<10x32xf32>
    %c0_9 = arith.constant 0 : index
    %c0_10 = arith.constant 0 : index
    %12 = vector.load %arg5[%c0_9, %c0_10] : memref<1x32xf32, #tpu.memory_space<vmem>>, vector<1x32xf32>
    %13 = vector.broadcast %12 : vector<1x32xf32> to vector<10x32xf32>
    %14 = arith.addf %11, %13 : vector<10x32xf32>
    %cst_11 = arith.constant 0.000000e+00 : f32
    %15 = vector.broadcast %cst_11 : f32 to vector<10x32xf32>
    %16 = arith.maximumf %14, %15 : vector<10x32xf32>
    %c0_12 = arith.constant 0 : index
    %c0_13 = arith.constant 0 : index
    %17 = vector.load %arg6[%c0_12, %c0_13] : memref<1x32xf32, #tpu.memory_space<vmem>>, vector<1x32xf32>
    %18 = tpu.transpose %16, [1, 0] : vector<10x32xf32> -> vector<32x10xf32>
    %cst_14 = arith.constant dense<0.000000e+00> : vector<1x10xf32>
    %19 = tpu.matmul %17, %18, %cst_14 {dimension_numbers = #tpu.dot_dimension_numbers<[1], [0], [0], [1], [0, 0, 1, 1], [], []>} : vector<1x32xf32>, vector<32x10xf32>, vector<1x10xf32> -> vector<1x10xf32>
    %c0_15 = arith.constant 0 : index
    %c0_16 = arith.constant 0 : index
    %20 = vector.load %arg7[%c0_15, %c0_16] : memref<1x1xf32, #tpu.memory_space<vmem>>, vector<1x1xf32>
    %21 = vector.broadcast %20 : vector<1x1xf32> to vector<1x10xf32>
    %22 = arith.addf %19, %21 : vector<1x10xf32>
    %23 = arith.negf %22 : vector<1x10xf32>
    %24 = math.exp %23 : vector<1x10xf32>
    %cst_17 = arith.constant 1.000000e+00 : f32
    %25 = vector.broadcast %cst_17 : f32 to vector<1x10xf32>
    %26 = arith.addf %25, %24 : vector<1x10xf32>
    %27 = arith.divf %25, %26 : vector<1x10xf32>
    %c0_18 = arith.constant 0 : index
    %c0_19 = arith.constant 0 : index
    %c0_20 = arith.constant 0 : index
    %28 = vector.load %arg8[%c0_18, %c0_19, %c0_20] : memref<1x1x10xf32, #tpu.memory_space<vmem>>, vector<1x1x10xf32>
    %29 = vector.shape_cast %28 : vector<1x1x10xf32> to vector<1x10xf32>
    %30 = vector.shape_cast %27 : vector<1x10xf32> to vector<1x1x10xf32>
    tpu.vector_store %arg8[%c0_18, %c0_19, %c0_20], %30 {strides = array<i32>} : memref<1x1x10xf32, #tpu.memory_space<vmem>>, vector<1x1x10xf32>,
    return
  }
  func.func @transform_0(%arg0: i32) -> (i32, i32) {
    %c0_i32 = arith.constant 0 : i32
    %c0_i32_0 = arith.constant 0 : i32
    return %arg0, %c0_i32 : i32, i32
  }
  func.func @transform_1(%arg0: i32) -> (i32, i32) {
    %c0_i32 = arith.constant 0 : i32
    %c0_i32_0 = arith.constant 0 : i32
    %c0_i32_1 = arith.constant 0 : i32
    return %c0_i32, %c0_i32_0 : i32, i32
  }
  func.func @transform_2(%arg0: i32) -> (i32, i32) {
    %c0_i32 = arith.constant 0 : i32
    %c0_i32_0 = arith.constant 0 : i32
    %c0_i32_1 = arith.constant 0 : i32
    return %c0_i32, %c0_i32_0 : i32, i32
  }
  func.func @transform_3(%arg0: i32) -> (i32, i32) {
    %c0_i32 = arith.constant 0 : i32
    %c0_i32_0 = arith.constant 0 : i32
    %c0_i32_1 = arith.constant 0 : i32
    return %c0_i32, %c0_i32_0 : i32, i32
  }
  func.func @transform_4(%arg0: i32) -> (i32, i32) {
    %c0_i32 = arith.constant 0 : i32
    %c0_i32_0 = arith.constant 0 : i32
    %c0_i32_1 = arith.constant 0 : i32
    return %c0_i32, %c0_i32_0 : i32, i32
  }
  func.func @transform_5(%arg0: i32) -> (i32, i32) {
    %c0_i32 = arith.constant 0 : i32
    %c0_i32_0 = arith.constant 0 : i32
    %c0_i32_1 = arith.constant 0 : i32
    return %c0_i32, %c0_i32_0 : i32, i32
  }
  func.func @transform_6(%arg0: i32) -> (i32, i32) {
    %c0_i32 = arith.constant 0 : i32
    %c0_i32_0 = arith.constant 0 : i32
    %c0_i32_1 = arith.constant 0 : i32
    return %c0_i32, %c0_i32_0 : i32, i32
  }
  func.func @transform_7(%arg0: i32) -> (i32, i32, i32) {
    %c0_i32 = arith.constant 0 : i32
    %c0_i32_0 = arith.constant 0 : i32
    %c0_i32_1 = arith.constant 0 : i32
    return %arg0, %c0_i32, %c0_i32_0 : i32, i32, i32
  }
}

</mosaic_0001>

<bundles_post_ra>
// kernel: tpu_custom_call.1
= control target key start
LH: loop header
LB: loop body
LE: loop exit
PB: predicated region body
PF: predicated region fallthrough
CT: control target
= control target key end

     0   :  { %s1849_s0 = inlined_call_operand.vmem [shape: f32[10,1320], index: 0, kind: input, shape index: {}]   ;;  %s1850_s1 = inlined_call_operand.vmem [shape: bf16[1320,32], index: 1, kind: input, shape index: {}]   ;;  %s1851_s2 = inlined_call_operand.vmem [shape: f32[1,32], index: 2, kind: input, shape index: {}]   ;;  %s1852_s3 = inlined_call_operand.vmem [shape: bf16[32,32], index: 3, kind: input, shape index: {}]   ;;  %s1853_s4 = inlined_call_operand.vmem [shape: f32[1,32], index: 4, kind: input, shape index: {}]   ;;  %s1854_s5 = inlined_call_operand.vmem [shape: f32[1,32], index: 5, kind: input, shape index: {}]   ;;  %s1855_s6 = inlined_call_operand.<no memory space> [shape: f32[1,1], index: 6, kind: input, shape index: {}]   ;;  %s1856_s7 = inlined_call_operand.hbm [shape: f32[1,1,10], index: 7, kind: output, shape index: {}]  }
   0x1   :  { %v12_v0 = vstv %s1855_s6 }
   0x2   :  { %13 = vst [vmem:[#allocation2] sm:$0x1] %v12_v0 }
   0x3   :  { %v1355_v1 = vld [vmem:[%s1850_s1 + $0x38] sm:$0xff]  ;;  %v1354_v5 = vld [vmem:[%s1850_s1 + $0x30] sm:$0xff]  ;;  %v1353_v9 = vld [vmem:[%s1850_s1 + $0x28] sm:$0xff] }
   0x4   :  { %v1363_v2 = vld [vmem:[%s1850_s1 + $0x78] sm:$0xff]  ;;  %735 = vmatpush.bf16.msra.mxu0 %v1355_v1  ;;  %v1362_v6 = vld [vmem:[%s1850_s1 + $0x70] sm:$0xff]  ;;  %v1361_v10 = vld [vmem:[%s1850_s1 + $0x68] sm:$0xff] }
   0x5   :  { %v1371_v3 = vld [vmem:[%s1850_s1 + $0xb8] sm:$0xff]  ;;  %749 = vmatpush.bf16.msra.mxu1 %v1363_v2  ;;  %v1370_v7 = vld [vmem:[%s1850_s1 + $0xb0] sm:$0xff]  ;;  %v1369_v11 = vld [vmem:[%s1850_s1 + $0xa8] sm:$0xff] }
   0x6   :  { %v1379_v4 = vld [vmem:[%s1850_s1 + $0xf8] sm:$0xff]  ;;  %763 = vmatpush.bf16.msra.mxu2 %v1371_v3  ;;  %v1378_v8 = vld [vmem:[%s1850_s1 + $0xf0] sm:$0xff]  ;;  %v1377_v12 = vld [vmem:[%s1850_s1 + $0xe8] sm:$0xff] }
   0x7   :  { %777 = vmatpush.bf16.msra.mxu3 %v1379_v4  ;;  %v1352_v13 = vld [vmem:[%s1850_s1 + $0x20] sm:$0xff]  ;;  %v1351_v17 = vld [vmem:[%s1850_s1 + $0x18] sm:$0xff]  ;;  %v1350_v21 = vld [vmem:[%s1850_s1 + $0x10] sm:$0xff] }
   0x8   :  { %736 = vmatpush.bf16.msra.mxu0 %v1354_v5  ;;  %v1360_v14 = vld [vmem:[%s1850_s1 + $0x60] sm:$0xff]  ;;  %v1359_v18 = vld [vmem:[%s1850_s1 + $0x58] sm:$0xff]  ;;  %v1358_v22 = vld [vmem:[%s1850_s1 + $0x50] sm:$0xff] }
   0x9   :  { %750 = vmatpush.bf16.msra.mxu1 %v1362_v6  ;;  %v1368_v15 = vld [vmem:[%s1850_s1 + $0xa0] sm:$0xff]  ;;  %v1367_v19 = vld [vmem:[%s1850_s1 + $0x98] sm:$0xff]  ;;  %v1366_v23 = vld [vmem:[%s1850_s1 + $0x90] sm:$0xff] }
   0xa   :  { %764 = vmatpush.bf16.msra.mxu2 %v1370_v7  ;;  %v1376_v16 = vld [vmem:[%s1850_s1 + $0xe0] sm:$0xff]  ;;  %v1375_v20 = vld [vmem:[%s1850_s1 + $0xd8] sm:$0xff]  ;;  %v1374_v24 = vld [vmem:[%s1850_s1 + $0xd0] sm:$0xff] }
   0xb   :  { %778 = vmatpush.bf16.msra.mxu3 %v1378_v8  ;;  %v1349_v25 = vld [vmem:[%s1850_s1 + $0x8] sm:$0xff] }
   0xc   :  { %737 = vmatpush.bf16.msra.mxu0 %v1353_v9  ;;  %v1357_v26 = vld [vmem:[%s1850_s1 + $0x48] sm:$0xff] }
   0xd   :  { %751 = vmatpush.bf16.msra.mxu1 %v1361_v10  ;;  %v1365_v27 = vld [vmem:[%s1850_s1 + $0x88] sm:$0xff] }
   0xe   :  { %765 = vmatpush.bf16.msra.mxu2 %v1369_v11  ;;  %v1373_v28 = vld [vmem:[%s1850_s1 + $0xc8] sm:$0xff] }
   0xf   :  { %779 = vmatpush.bf16.msra.mxu3 %v1377_v12 }
  0x10   :  { %738 = vmatpush.bf16.msra.mxu0 %v1352_v13 }
  0x11   :  { %752 = vmatpush.bf16.msra.mxu1 %v1360_v14 }
  0x12   :  { %766 = vmatpush.bf16.msra.mxu2 %v1368_v15 }
  0x13   :  { %780 = vmatpush.bf16.msra.mxu3 %v1376_v16 }
  0x14   :  { %739 = vmatpush.bf16.msra.mxu0 %v1351_v17 }
  0x15   :  { %753 = vmatpush.bf16.msra.mxu1 %v1359_v18 }
  0x16   :  { %767 = vmatpush.bf16.msra.mxu2 %v1367_v19 }
  0x17   :  { %781 = vmatpush.bf16.msra.mxu3 %v1375_v20 }
  0x18   :  { %740 = vmatpush.bf16.msra.mxu0 %v1350_v21 }
  0x19   :  { %754 = vmatpush.bf16.msra.mxu1 %v1358_v22 }
  0x1a   :  { %768 = vmatpush.bf16.msra.mxu2 %v1366_v23 }
  0x1b   :  { %782 = vmatpush.bf16.msra.mxu3 %v1374_v24 }
  0x1c   :  { %14 = vsyncpa [#allocation4], 0  ;;  %v1348_v29 = vld [vmem:[%s1850_s1] sm:$0xff]  ;;  %741 = vmatpush.bf16.msra.mxu0 %v1349_v25  ;;  %v1387_v32 = vld [vmem:[%s1850_s1 + $0x138] sm:$0xff]  ;;  %vm731_vm0 = vcmask 1043456   ;;  %vm727_vm1 = vcmask 326656  }
  0x1d   :  { %v1356_v30 = vld [vmem:[%s1850_s1 + $0x40] sm:$0xff]  ;;  %755 = vmatpush.bf16.msra.mxu1 %v1357_v26  ;;  %v41_v34 = vld [vmem:[%s1849_s0 + $0x58] sm:$0x3]  ;;  %v32_v36 = vld [vmem:[%s1849_s0 + $0x10] sm:$0xff]  ;;  %vm912_vm2 = vcmask 261120   ;;  %s997_s28 = sshll.u32 %s1856_s7, 4  ;;  %s998_s28 = int_to_ptr.hbm [resolvable:$true] %s997_s28 }
  0x1e   :  { %v1364_v31 = vld [vmem:[%s1850_s1 + $0x80] sm:$0xff]  ;;  %769 = vmatpush.bf16.msra.mxu2 %v1365_v27  ;;  %v1395_v35 = vld [vmem:[%s1850_s1 + $0x178] sm:$0xff]  ;;  %v43_v37 = vld [vmem:[%s1849_s0 + $0x68] sm:$0x3]  ;;  %vm988_vm6 = vcmask 73728  }
  0x1f   :  { %v30_v33 = vld [vmem:[%s1849_s0] sm:$0xff]  ;;  %783 = vmatpush.bf16.msra.mxu3 %v1373_v28  ;;  %v1403_v38 = vld [vmem:[%s1850_s1 + $0x1b8] sm:$0xff]  ;;  %v31_v39 = vld [vmem:[%s1849_s0 + $0x8] sm:$0xff]  ;;  %v54_v44 = vpack.c.bf16 %v43_v37, %v32_v36 }
  0x20   :  { %v42_v40 = vld [vmem:[%s1849_s0 + $0x60] sm:$0x3]  ;;  %v52_v42 = vpack.c.bf16 %v41_v34, %v30_v33  ;;  %742 = vmatpush.bf16.msra.mxu0 %v1348_v29  ;;  %v1411_v43 = vld [vmem:[%s1850_s1 + $0x1f8] sm:$0xff]  ;;  %v44_v46 = vld [vmem:[%s1849_s0 + $0x70] sm:$0x3] }
  0x21   :  { %v1372_v41 = vld [vmem:[%s1850_s1 + $0xc0] sm:$0xff]  ;;  %756 = vmatpush.bf16.msra.mxu1 %v1356_v30  ;;  %v33_v45 = vld [vmem:[%s1849_s0 + $0x18] sm:$0xff]  ;;  %v1386_v47 = vld [vmem:[%s1850_s1 + $0x130] sm:$0xff]  ;;  %v53_v48 = vpack.c.bf16 %v42_v40, %v31_v39 }
  0x22   :  { %770 = vmatpush.bf16.msra.mxu2 %v1364_v31  ;;  %v1394_v49 = vld [vmem:[%s1850_s1 + $0x170] sm:$0xff]  ;;  %v55_v51 = vpack.c.bf16 %v44_v46, %v33_v45  ;;  %v1385_v53 = vld [vmem:[%s1850_s1 + $0x128] sm:$0xff]  ;;  %v1384_v57 = vld [vmem:[%s1850_s1 + $0x120] sm:$0xff] }
  0x23   :  { %v1402_v50 = vld [vmem:[%s1850_s1 + $0x1b0] sm:$0xff]  ;;  %784 = vmatpush.bf16.msra.mxu3 %v1372_v41  ;;  %743 = vmatmul.bf16.vlgmr.msra.gmra.mxu0 %v52_v42  ;;  %v1393_v54 = vld [vmem:[%s1850_s1 + $0x168] sm:$0xff]  ;;  %v1392_v58 = vld [vmem:[%s1850_s1 + $0x160] sm:$0xff] }
  0x24   :  { %791 = vmatpush.bf16.msrb.mxu0 %v1387_v32  ;;  %v1410_v52 = vld [vmem:[%s1850_s1 + $0x1f0] sm:$0xff]  ;;  %757 = vmatmul.bf16.vlgmr.msra.gmra.mxu1 %v53_v48  ;;  %v1401_v55 = vld [vmem:[%s1850_s1 + $0x1a8] sm:$0xff]  ;;  %v1400_v59 = vld [vmem:[%s1850_s1 + $0x1a0] sm:$0xff] }
  0x25   :  { %805 = vmatpush.bf16.msrb.mxu1 %v1395_v35  ;;  %771 = vmatmul.bf16.vlgmr.msra.gmra.mxu2 %v54_v44  ;;  %v1409_v56 = vld [vmem:[%s1850_s1 + $0x1e8] sm:$0xff]  ;;  %v1408_v60 = vld [vmem:[%s1850_s1 + $0x1e0] sm:$0xff]  ;;  %v1383_v61 = vld [vmem:[%s1850_s1 + $0x118] sm:$0xff] }
  0x26   :  { %819 = vmatpush.bf16.msrb.mxu2 %v1403_v38  ;;  %785 = vmatmul.bf16.vlgmr.msra.gmra.mxu3 %v55_v51  ;;  %v1391_v62 = vld [vmem:[%s1850_s1 + $0x158] sm:$0xff]  ;;  %v1382_v1 = vld [vmem:[%s1850_s1 + $0x110] sm:$0xff]  ;;  %v1381_v6 = vld [vmem:[%s1850_s1 + $0x108] sm:$0xff] }
  0x27   :  { %833 = vmatpush.bf16.msrb.mxu3 %v1411_v43  ;;  %v1399_v63 = vld [vmem:[%s1850_s1 + $0x198] sm:$0xff]  ;;  %v1390_v2 = vld [vmem:[%s1850_s1 + $0x150] sm:$0xff]  ;;  %v1389_v7 = vld [vmem:[%s1850_s1 + $0x148] sm:$0xff] }
  0x28   :  { %792 = vmatpush.bf16.msrb.mxu0 %v1386_v47  ;;  %v1407_v0 = vld [vmem:[%s1850_s1 + $0x1d8] sm:$0xff]  ;;  %v1398_v3 = vld [vmem:[%s1850_s1 + $0x190] sm:$0xff]  ;;  %v1397_v8 = vld [vmem:[%s1850_s1 + $0x188] sm:$0xff] }
  0x29   :  { %806 = vmatpush.bf16.msrb.mxu1 %v1394_v49  ;;  %v1406_v4 = vld [vmem:[%s1850_s1 + $0x1d0] sm:$0xff]  ;;  %v1405_v9 = vld [vmem:[%s1850_s1 + $0x1c8] sm:$0xff]  ;;  %v1380_v11 = vld [vmem:[%s1850_s1 + $0x100] sm:$0xff] }
  0x2a   :  { %820 = vmatpush.bf16.msrb.mxu2 %v1402_v50  ;;  %v227_v5 = vld [vmem:[%s1850_s1 + $0x290] sm:$0xf]  ;;  %v1388_v12 = vld [vmem:[%s1850_s1 + $0x140] sm:$0xff]  ;;  %v45_v15 = vld [vmem:[%s1849_s0 + $0x78] sm:$0x3] }
  0x2b   :  { %834 = vmatpush.bf16.msrb.mxu3 %v1410_v52  ;;  %v561_v10 = vunpack.c.l.b16 %v227_v5  ;;  %v1396_v13 = vld [vmem:[%s1850_s1 + $0x180] sm:$0xff]  ;;  %v36_v16 = vld [vmem:[%s1849_s0 + $0x30] sm:$0xff]  ;;  %v47_v17 = vld [vmem:[%s1849_s0 + $0x88] sm:$0x3] }
  0x2c   :  { %793 = vmatpush.bf16.msrb.mxu0 %v1385_v53  ;;  %v34_v14 = vld [vmem:[%s1849_s0 + $0x20] sm:$0xff]  ;;  %v35_v18 = vld [vmem:[%s1849_s0 + $0x28] sm:$0xff]  ;;  %v1419_v20 = vld [vmem:[%s1850_s1 + $0x238] sm:$0xff]  ;;  %v58_v27 = vpack.c.bf16 %v47_v17, %v36_v16 }
  0x2d   :  { %807 = vmatpush.bf16.msrb.mxu1 %v1393_v54  ;;  %v46_v19 = vld [vmem:[%s1849_s0 + $0x80] sm:$0x3]  ;;  %v1427_v21 = vld [vmem:[%s1850_s1 + $0x278] sm:$0xff]  ;;  %v644_v22 = vpack.c.b16 %v561_v10, %v561_v10  ;;  %v56_v24 = vpack.c.bf16 %v45_v15, %v34_v14  ;;  %v48_v26 = vld [vmem:[%s1849_s0 + $0x90] sm:$0x3] }
  0x2e   :  { %821 = vmatpush.bf16.msrb.mxu2 %v1401_v55  ;;  %v1404_v23 = vld [vmem:[%s1850_s1 + $0x1c0] sm:$0xff]  ;;  %v37_v25 = vld [vmem:[%s1849_s0 + $0x38] sm:$0xff]  ;;  %v57_v28 = vpack.c.bf16 %v46_v19, %v35_v18  ;;  %v1418_v30 = vld [vmem:[%s1850_s1 + $0x230] sm:$0xff] }
  0x2f   :  { %835 = vmatpush.bf16.msrb.mxu3 %v1409_v56  ;;  %v59_v29 = vpack.c.bf16 %v48_v26, %v37_v25  ;;  %v733_v31 = vsel %vm731_vm0, %v644_v22, 0  ;;  %v1426_v32 = vld [vmem:[%s1850_s1 + $0x270] sm:$0xff]  ;;  %v1429_v33 = vld [vmem:[%s1850_s1 + $0x288] sm:$0xff]  ;;  %v1428_v36 = vld [vmem:[%s1850_s1 + $0x280] sm:$0xff] }
  0x30   :  { %794 = vmatpush.bf16.msrb.mxu0 %v1384_v57  ;;  %v1417_v34 = vld [vmem:[%s1850_s1 + $0x228] sm:$0xff]  ;;  %v1416_v37 = vld [vmem:[%s1850_s1 + $0x220] sm:$0xff]  ;;  %v40_v39 = vld [vmem:[%s1849_s0 + $0x50] sm:$0xff] }
  0x31   :  { %808 = vmatpush.bf16.msrb.mxu1 %v1392_v58  ;;  %v1425_v35 = vld [vmem:[%s1850_s1 + $0x268] sm:$0xff]  ;;  %v1424_v38 = vld [vmem:[%s1850_s1 + $0x260] sm:$0xff]  ;;  %v1415_v41 = vld [vmem:[%s1850_s1 + $0x218] sm:$0xff] }
  0x32   :  { %822 = vmatpush.bf16.msrb.mxu2 %v1400_v59  ;;  %v51_v40 = vld [vmem:[%s1849_s0 + $0xa8] sm:$0x3]  ;;  %v1423_v42 = vld [vmem:[%s1850_s1 + $0x258] sm:$0xff]  ;;  %v1414_v44 = vld [vmem:[%s1850_s1 + $0x210] sm:$0xff] }
  0x33   :  { %836 = vmatpush.bf16.msrb.mxu3 %v1408_v60  ;;  %v62_v43 = vpack.c.bf16 %v51_v40, %v40_v39  ;;  %v1422_v45 = vld [vmem:[%s1850_s1 + $0x250] sm:$0xff]  ;;  %v1413_v46 = vld [vmem:[%s1850_s1 + $0x208] sm:$0xff]  ;;  %v1412_v48 = vld [vmem:[%s1850_s1 + $0x200] sm:$0xff] }
  0x34   :  { %795 = vmatpush.bf16.msrb.mxu0 %v1383_v61  ;;  %v1421_v47 = vld [vmem:[%s1850_s1 + $0x248] sm:$0xff]  ;;  %v38_v49 = vld [vmem:[%s1849_s0 + $0x40] sm:$0xff]  ;;  %v49_v50 = vld [vmem:[%s1849_s0 + $0x98] sm:$0x3] }
  0x35   :  { %809 = vmatpush.bf16.msrb.mxu1 %v1391_v62  ;;  %v1420_v51 = vld [vmem:[%s1850_s1 + $0x240] sm:$0xff]  ;;  %v39_v52 = vld [vmem:[%s1849_s0 + $0x48] sm:$0xff]  ;;  %v60_v54 = vpack.c.bf16 %v49_v50, %v38_v49 }
  0x36   :  { %823 = vmatpush.bf16.msrb.mxu2 %v1399_v63  ;;  %v50_v53 = vld [vmem:[%s1849_s0 + $0xa0] sm:$0x3] }
  0x37   :  { %837 = vmatpush.bf16.msrb.mxu3 %v1407_v0  ;;  %v61_v55 = vpack.c.bf16 %v50_v53, %v39_v52  ;;  %v1435_v59 = vld [vmem:[%s1851_s2] ss:$0 sm:$0xff] }
  0x38   :  { %796 = vmatpush.bf16.msrb.mxu0 %v1382_v1 }
  0x39   :  { %810 = vmatpush.bf16.msrb.mxu1 %v1390_v2  ;;  %v1431_v2 = vld [vmem:[%s1852_s3 + $0x8] sm:$0xff] }
  0x3a   :  { %824 = vmatpush.bf16.msrb.mxu2 %v1398_v3 }
  0x3b   :  { %838 = vmatpush.bf16.msrb.mxu3 %v1406_v4 }
  0x3c   :  { %797 = vmatpush.bf16.msrb.mxu0 %v1381_v6 }
  0x3d   :  { %811 = vmatpush.bf16.msrb.mxu1 %v1389_v7  ;;  %v1430_v7 = vld [vmem:[%s1852_s3] sm:$0xff] }
  0x3e   :  { %825 = vmatpush.bf16.msrb.mxu2 %v1397_v8 }
  0x3f   :  { %839 = vmatpush.bf16.msrb.mxu3 %v1405_v9 }
  0x40   :  { %798 = vmatpush.bf16.msrb.mxu0 %v1380_v11 }
  0x41   :  { %812 = vmatpush.bf16.msrb.mxu1 %v1388_v12 }
  0x42   :  { %826 = vmatpush.bf16.msrb.mxu2 %v1396_v13 }
  0x43   :  { %840 = vmatpush.bf16.msrb.mxu3 %v1404_v23  ;;  %799 = vmatmul.bf16.vlgmr.msrb.gmra.mxu0 %v56_v24 }
  0x44   :  { %847 = vmatpush.bf16.msra.mxu0 %v1419_v20  ;;  %813 = vmatmul.bf16.vlgmr.msrb.gmra.mxu1 %v57_v28 }
  0x45   :  { %861 = vmatpush.bf16.msra.mxu1 %v1427_v21  ;;  %827 = vmatmul.bf16.vlgmr.msrb.gmra.mxu2 %v58_v27 }
  0x46   :  { %880 = vmatpush.bf16.msra.mxu2 %v733_v31  ;;  %841 = vmatmul.bf16.vlgmr.msrb.gmra.mxu3 %v59_v29 }
  0x47   :  { %922 = vmatpush.bf16.msra.mxu3 %v1431_v2 }
  0x48   :  { %848 = vmatpush.bf16.msra.mxu0 %v1418_v30 }
  0x49   :  { %862 = vmatpush.bf16.msra.mxu1 %v1426_v32 }
  0x4a   :  { %881 = vmatpush.bf16.msra.mxu2 %v1429_v33 }
  0x4b   :  { %923 = vmatpush.bf16.msra.mxu3 %v1430_v7 }
  0x4c   :  { %849 = vmatpush.bf16.msra.mxu0 %v1417_v34 }
  0x4d   :  { %863 = vmatpush.bf16.msra.mxu1 %v1425_v35 }
  0x4e   :  { %882 = vmatpush.bf16.msra.mxu2 %v1428_v36 }
  0x50   :  { %850 = vmatpush.bf16.msra.mxu0 %v1416_v37 }
  0x51   :  { %864 = vmatpush.bf16.msra.mxu1 %v1424_v38 }
  0x54   :  { %851 = vmatpush.bf16.msra.mxu0 %v1415_v41 }
  0x55   :  { %865 = vmatpush.bf16.msra.mxu1 %v1423_v42  ;;  %1334 = vmatmul.msk.bf16.vlgmr.msra.gmra.mxu2 %vm727_vm1, %v62_v43  ;;  %v933_v42 = vld [vmem:[#allocation2] sm:$0x1]  ;;  %v1467_v43 = vmov 0  }
  0x56   :  { %1434 = vset.pattern.permute.xlu0 %v1467_v43 }
  0x57   :  { %936 = vperm.xlu0 %1434, %v933_v42  }
  0x58   :  { %852 = vmatpush.bf16.msra.mxu0 %v1414_v44 }
  0x59   :  { %866 = vmatpush.bf16.msra.mxu1 %v1422_v45  ;;  %v1436_v45 = vld [vmem:[%s1853_s4] ss:$0 sm:$0xff]  ;;  %s1468_s4 = smov [#allocation3]  }
  0x5c   :  { %853 = vmatpush.bf16.msra.mxu0 %v1413_v46 }
  0x5d   :  { %867 = vmatpush.bf16.msra.mxu1 %v1421_v47 }
  0x60   :  { %854 = vmatpush.bf16.msra.mxu0 %v1412_v48 }
  0x61   :  { %868 = vmatpush.bf16.msra.mxu1 %v1420_v51  ;;  %v932_v51 = vld [vmem:[%s1854_s5] sm:$0x1]  ;;  %s995_s5 = sshll.u32 %s1468_s4, 4  ;;  %s996_s5 = int_to_ptr.vmem [resolvable:$true] %s995_s5 }
  0x63   :  { %855 = vmatmul.bf16.vlgmr.msra.gmra.mxu0 %v60_v54 }
  0x64   :  { %869 = vmatmul.bf16.vlgmr.msra.gmra.mxu1 %v61_v55 }
  0xa0   :  { %v744_v56 = vpop.f32.mrf.mxu0 }
  0xa1   :  { %v758_v57 = vpop.f32.mrf.mxu1  ;;  %v745_v61 = vadd.f32 %v1435_v59, %v744_v56 }
  0xa3   :  { %v759_v1 = vadd.f32 %v758_v57, %v745_v61 }
  0xa8   :  { %v772_v58 = vpop.f32.mrf.mxu2  ;;  %v746_v60 = vpop.f32.mrf.mxu0 }
  0xa9   :  { %v760_v62 = vpop.f32.mrf.mxu1  ;;  %v786_v63 = vpop.f32.mrf.mxu3  ;;  %v773_v3 = vadd.f32 %v772_v58, %v759_v1  ;;  %v747_v5 = vadd.f32 %v1435_v59, %v746_v60 }
  0xab   :  { %v787_v10 = vadd.f32 %v786_v63, %v773_v3  ;;  %v761_v11 = vadd.f32 %v760_v62, %v747_v5 }
  0xb0   :  { %v774_v0 = vpop.f32.mrf.mxu2 }
  0xb1   :  { %v788_v8 = vpop.f32.mrf.mxu3  ;;  %v775_v13 = vadd.f32 %v774_v0, %v761_v11 }
  0xb3   :  { %v789_v19 = vadd.f32 %v788_v8, %v775_v13 }
  0xc0   :  { %v800_v4 = vpop.f32.mrf.mxu0 }
  0xc1   :  { %v814_v6 = vpop.f32.mrf.mxu1  ;;  %v801_v12 = vadd.f32 %v800_v4, %v787_v10 }
  0xc3   :  { %v815_v15 = vadd.f32 %v814_v6, %v801_v12 }
  0xc8   :  { %v828_v9 = vpop.f32.mrf.mxu2  ;;  %v802_v14 = vpop.f32.mrf.mxu0 }
  0xc9   :  { %v816_v16 = vpop.f32.mrf.mxu1  ;;  %v842_v17 = vpop.f32.mrf.mxu3  ;;  %v829_v20 = vadd.f32 %v828_v9, %v815_v15  ;;  %v803_v21 = vadd.f32 %v802_v14, %v789_v19 }
  0xca   :  { %v937_v52 = vpop.permute.xlu0 %936 }
  0xcb   :  { %v843_v23 = vadd.f32 %v842_v17, %v829_v20  ;;  %v817_v24 = vadd.f32 %v816_v16, %v803_v21  ;;  %v939_v53 = vperm.slane %v937_v52, 0 }
  0xd0   :  { %v830_v18 = vpop.f32.mrf.mxu2 }
  0xd1   :  { %v831_v27 = vadd.f32 %v830_v18, %v817_v24  ;;  %v844_v29 = vpop.f32.mrf.mxu3 }
  0xd3   :  { %v845_v30 = vadd.f32 %v844_v29, %v831_v27 }
  0xd8   :  { %v884_v26 = vpop.f32.mrf.mxu2 }
  0xe0   :  { %v856_v22 = vpop.f32.mrf.mxu0  ;;  %v886_v37 = vpop.f32.mrf.mxu2 }
  0xe1   :  { %v870_v25 = vpop.f32.mrf.mxu1  ;;  %v857_v28 = vadd.f32 %v856_v22, %v843_v23 }
  0xe3   :  { %v871_v31 = vadd.f32 %v870_v25, %v857_v28 }
  0xe5   :  { %v885_v35 = vadd.f32 %v884_v26, %v871_v31 }
  0xe7   :  { %v889_v39 = vmax.f32 %v885_v35, 0.0 }
  0xe8   :  { %v858_v32 = vpop.f32.mrf.mxu0 }
  0xe9   :  { %v859_v33 = vadd.f32 %v858_v32, %v845_v30  ;;  %v872_v34 = vpop.f32.mrf.mxu1 }
  0xeb   :  { %v873_v36 = vadd.f32 %v872_v34, %v859_v33 }
  0xed   :  { %v887_v38 = vadd.f32 %v886_v37, %v873_v36 }
  0xef   :  { %v890_v40 = vmax.f32 %v887_v38, 0.0 }
  0xf1   :  { %v891_v41 = vpack.c.bf16 %v890_v40, %v889_v39 }
  0xf3   :  { %1343 = vmatmul.msk.bf16.vlgmr.msra.gmra.mxu3 %vm912_vm2, %v891_v41 }
 0x176   :  { %v925_v44 = vpop.f32.mrf.mxu3 }
 0x177   :  { %v926_v48 = vadd.f32 %v1436_v45, %v925_v44 }
 0x179   :  { %v930_v50 = vmax.f32 %v926_v48, 0.0 }
 0x17e   :  { %v927_v46 = vpop.f32.mrf.mxu3 }
 0x17f   :  { %v928_v47 = vadd.f32 %v1436_v45, %v927_v46 }
 0x181   :  { %v931_v49 = vmax.f32 %v928_v47, 0.0 }
 0x183   :  { %1344 = vmatpush.xpose.msk.msrb.mxu2 %vm912_vm2, %v931_v49 }
 0x187   :  { %1345 = vmatpush.xpose.msk.msrb.mxu2 %vm912_vm2, %v930_v50 }
 0x18a   :  { %1346 = vmatmul.msk.f32.vlgmr.msrb.gmra.mxu2 %vm912_vm2, %v932_v51 }
 0x20d   :  { %v966_v54 = vpop.f32.mrf.mxu2 }
 0x20e   :  { %v967_v55 = vadd.f32 %v966_v54, %v939_v53 }
 0x210   :  { %v1347_v56 = vmul.f32 -1.442695, %v967_v55 }
 0x212   :  { %1437 = vpow2.f32 %v1347_v56 }
 0x218   :  { %v1438_v57 = vpop.eup %1437 }
 0x219   :  { %v972_v58 = vadd.f32 1.0, %v1438_v57 }
 0x21b   :  { %1439 = vrcp.f32 %v972_v58  ;;  %v984_v62 = vand.u32 2147483648, %v972_v58  ;;  %v982_v0 = vand.u32 2147483647, %v972_v58  ;;  %vm978_vm4 = vweird.f32 %v972_v58 }
 0x21d   :  { %v985_v2 = vor.u32 1.1754944e-38, %v984_v62  ;;  %vm983_vm7 = vcmp.eq.f32.partialorder %v982_v0, 8.507059e+37 }
 0x221   :  { %v1440_v59 = vpop.eup %1439 }
 0x222   :  { %v974_v60 = vmul.f32 %v1440_v59, %v972_v58  ;;  %vm979_vm3 = vweird.f32 %v1440_v59 }
 0x223   :  { %vm980_vm5 = vmor %vm978_vm4, %vm979_vm3 }
 0x224   :  { %v975_v61 = vsub.f32 1.0, %v974_v60 }
 0x226   :  { %v976_v63 = vmul.f32 %v1440_v59, %v975_v61 }
 0x228   :  { %v977_v1 = vadd.f32 %v1440_v59, %v976_v63 }
 0x22a   :  { %v981_v3 = vsel %vm980_vm5, %v1440_v59, %v977_v1 }
 0x22b   :  { %v986_v4 = vsel %vm983_vm7, %v985_v2, %v981_v3 }
 0x22c   :  { %989 = vst.msk [vmem:[#allocation3] sm:$0x1] %vm988_vm6, %v986_v4 }
 0x22d   :  { %1000 = dma.vmem_to_hbm [thread:$0]  %s996_s5, 16, %s998_s28, [#allocation4]  }
 0x22e   :  { %1465 = dma.done.wait [#allocation4], 16  }
 0x22f   :  { %1466 = vsyncadd [#allocation4], 4294967280 }
 0x230   :  { %1005 = vsyncpa [#allocation4], 1 }

</bundles_post_ra>
